<compile_context>
chip_gen: v7x
topology: tpu7x:2x2x1
jax: 0.10.0
libtpu: 0.0.40
codegen_flags: <defaults>
</compile_context>

<pallas_src>
import functools

import jax
import jax.numpy as jnp
from jax.experimental import pallas as pl
from jax.experimental.pallas import tpu as pltpu


def _channel_attention_kernel(x_ref, w1_ref, w2_ref, o_ref,
                              sum_acc, max_acc,
                              *, hw_tile, hw_total, needs_mask):
    # x_ref   : (1, C, hw_tile)  NCHW chunk — HW on lanes, C on sublanes
    # w1_ref  : (Ch, C)          fc1 weight (1x1 conv, no bias)
    # w2_ref  : (C, Ch)          fc2 weight
    # o_ref   : (1, C, 1)        per-batch attention weights
    # sum_acc : (C, 1) f32       running spatial sum   (VMEM scratch)
    # max_acc : (C, 1) f32       running spatial max   (VMEM scratch)
    k = pl.program_id(1)
    nk = pl.num_programs(1)

    @pl.when(k == 0)
    def _():
        sum_acc[...] = jnp.zeros_like(sum_acc)
        max_acc[...] = jnp.full_like(max_acc, -jnp.inf)

    # HBM traffic stays in the input's native dtype; accumulate in f32.
    x = x_ref[0].astype(jnp.float32)                          # (C, hw_tile)

    def accumulate(x_for_sum, x_for_max):
        sum_acc[...] += jnp.sum(x_for_sum, axis=-1, keepdims=True)
        max_acc[...] = jnp.maximum(
            max_acc[...], jnp.max(x_for_max, axis=-1, keepdims=True))

    if needs_mask:
        # Only the last HW tile contains out-of-bounds (unspecified) lanes;
        # every other tile accumulates unmasked.
        @pl.when(k < nk - 1)
        def _():
            accumulate(x, x)

        @pl.when(k == nk - 1)
        def _():
            cols = k * hw_tile + jax.lax.broadcasted_iota(jnp.int32, x.shape, 1)
            valid = cols < hw_total
            accumulate(jnp.where(valid, x, 0.0),
                       jnp.where(valid, x, -jnp.inf))
    else:
        accumulate(x, x)

    @pl.when(k == nk - 1)
    def _():
        # Squeeze-excitation MLP: runs once per image, off the DMA critical
        # path (overlaps with the next batch element's prefetch).
        avg = sum_acc[...] * (1.0 / hw_total)                 # (C, 1)
        mx = max_acc[...]                                     # (C, 1)
        w1 = w1_ref[...]
        h = (jnp.maximum(jnp.dot(w1, avg,
                                 preferred_element_type=jnp.float32), 0.0)
             + jnp.maximum(jnp.dot(w1, mx,
                                   preferred_element_type=jnp.float32), 0.0))
        out = jnp.dot(w2_ref[...], h,
                      preferred_element_type=jnp.float32)     # (C, 1)
        o_ref[0] = jax.nn.sigmoid(out).astype(o_ref.dtype)


def channel_attention(x_nchw, w1, w2, *, target_block_bytes=4 << 20):
    """Pallas ChannelAttention forward.

    x_nchw: (B, C, H, W), any float dtype; w1: (C//16, C); w2: (C, C//16).
    Returns (B, C, 1, 1) attention weights in x's dtype (matches PyTorch).
    """
    B, C, H, W = x_nchw.shape
    Ch = w1.shape[0]
    assert w1.shape == (Ch, C) and w2.shape == (C, Ch)

    HW = H * W
    # Free reshape: NCHW -> (B, C, HW). No transpose, no dtype cast, no pad.
    x = x_nchw.reshape(B, C, HW)
    itemsize = x.dtype.itemsize

    # HW tile (lane axis): biggest chunk <= target_block_bytes, a multiple of
    # 128 (or the full extent when HW is small). Last tile may be partial; the
    # kernel masks it — no jnp.pad pass over HBM.
    bytes_per_col = max(1, C * itemsize)
    cols = max(1, target_block_bytes // bytes_per_col)
    if cols >= HW or HW <= 128:
        hw_tile = HW
    else:
        hw_tile = max(128, (cols // 128) * 128)
    n_hw = -(-HW // hw_tile)
    needs_mask = (HW % hw_tile) != 0

    kernel = functools.partial(
        _channel_attention_kernel,
        hw_tile=hw_tile, hw_total=HW, needs_mask=needs_mask)

    compiler_kwargs = dict(dimension_semantics=("parallel", "arbitrary"))
    # Double-buffered input block + weights + scratch; only raise the scoped
    # VMEM limit when larger-than-default tiles are requested (v5e default is
    # 16 MiB scoped even though physical VMEM is 128 MiB).
    vmem_need = (2 * C * hw_tile * itemsize
                 + (w1.size + w2.size) * 4 + 8 * C * 4 + (1 << 20))
    if vmem_need > (14 << 20):
        compiler_kwargs["vmem_limit_bytes"] = int(min(vmem_need, 64 << 20))

    out = pl.pallas_call(
        kernel,
        out_shape=jax.ShapeDtypeStruct((B, C, 1), x.dtype),
        grid_spec=pltpu.PrefetchScalarGridSpec(
            num_scalar_prefetch=0,
            grid=(B, n_hw),
            in_specs=[
                pl.BlockSpec((1, C, hw_tile), lambda b, k: (b, 0, k)),
                pl.BlockSpec((Ch, C), lambda b, k: (0, 0)),
                pl.BlockSpec((C, Ch), lambda b, k: (0, 0)),
            ],
            out_specs=pl.BlockSpec((1, C, 1), lambda b, k: (b, 0, 0)),
            scratch_shapes=[
                pltpu.VMEM((C, 1), jnp.float32),   # running sum
                pltpu.VMEM((C, 1), jnp.float32),   # running max
            ],
        ),
        # TODO(synk): for B == 1 on v7x only one TensorCore engages; split the
        # HW reduction across cores (core_map + tiny combine) if that matters.
        compiler_params=pltpu.CompilerParams(**compiler_kwargs),
    )(x, w1.astype(jnp.float32), w2.astype(jnp.float32))

    return out.reshape(B, C, 1, 1)


def reference(x_nchw, w1, w2):
    # Pure-JAX reference matching the PyTorch forward exactly (f32 math).
    x = x_nchw.astype(jnp.float32)
    B, C, H, W = x.shape
    avg = jnp.mean(x, axis=(2, 3))                     # (B, C)
    mx = jnp.max(x, axis=(2, 3))                       # (B, C)

    def mlp(p):                                        # p: (B, C)
        h = jnp.maximum(p @ w1.T, 0.0)                 # (B, Ch)
        return h @ w2.T                                # (B, C)

    out = jax.nn.sigmoid(mlp(avg) + mlp(mx))
    return out.reshape(B, C, 1, 1)


if __name__ == "__main__":
    # in_planes must be >= 16 so that in_planes // 16 >= 1 (as in the module).
    B, C, H, W = 2, 32, 16, 16
    Ch = C // 16

    key = jax.random.PRNGKey(0)
    kx, k1, k2 = jax.random.split(key, 3)
    x = jax.random.normal(kx, (B, C, H, W), dtype=jnp.float32)
    # Deterministic synthetic Conv2d(1x1, bias=False) weights.
    w1 = jax.random.normal(k1, (Ch, C), dtype=jnp.float32) * 0.1
    w2 = jax.random.normal(k2, (C, Ch), dtype=jnp.float32) * 0.1

    # 1) f32 input, single-tile path.
    out = jax.block_until_ready(channel_attention(x, w1, w2))
    ref = reference(x, w1, w2)
    assert out.shape == (B, C, 1, 1)
    assert jnp.allclose(out, ref, atol=1e-5, rtol=1e-5), (
        float(jnp.max(jnp.abs(out - ref))))

    # 2) Multi-tile path with a partial (masked) last HW tile, no padding copy.
    x2 = jax.random.normal(kx, (1, C, 13, 13), dtype=jnp.float32)
    out2 = jax.block_until_ready(
        channel_attention(x2, w1, w2, target_block_bytes=128 * C * 4))
    ref2 = reference(x2, w1, w2)
    assert jnp.allclose(out2, ref2, atol=1e-5, rtol=1e-5), (
        float(jnp.max(jnp.abs(out2 - ref2))))

    # 3) bf16 activations stay bf16 in HBM (halves DMA traffic).
    xb = x.astype(jnp.bfloat16)
    out3 = jax.block_until_ready(channel_attention(xb, w1, w2))
    ref3 = reference(xb, w1, w2)
    assert jnp.allclose(out3.astype(jnp.float32), ref3, atol=2e-2, rtol=2e-2), (
        float(jnp.max(jnp.abs(out3.astype(jnp.float32) - ref3))))

    print("KERNEL_OK")
</pallas_src>

<mosaic_0001>
module attributes {stable_mosaic.version = 11 : i64} {
  func.func @_channel_attention_kernel(%arg0: i32, %arg1: i32, %arg2: memref<1x32x256xf32, #tpu.memory_space<vmem>>, %arg3: memref<2x32xf32, #tpu.memory_space<vmem>>, %arg4: memref<32x2xf32, #tpu.memory_space<vmem>>, %arg5: memref<1x32x1xf32, #tpu.memory_space<vmem>>, %arg6: memref<32x1xf32, #tpu.memory_space<vmem>>, %arg7: memref<32x1xf32, #tpu.memory_space<vmem>>) attributes {dimension_semantics = [#tpu.dimension_semantics<parallel>, #tpu.dimension_semantics<arbitrary>], iteration_bounds = array<i64: 2, 1>, scalar_prefetch = 0 : i64, scratch_operands = 2 : i64, tpu.core_type = #tpu.core_type<tc>, window_params = [{transform_indices = @transform_0, window_bounds = array<i64: 1, 32, 256>}, {pipeline_mode = #tpu.pipeline_mode<synchronous>, transform_indices = @transform_1, window_bounds = array<i64: 2, 32>}, {pipeline_mode = #tpu.pipeline_mode<synchronous>, transform_indices = @transform_2, window_bounds = array<i64: 32, 2>}, {transform_indices = @transform_3, window_bounds = array<i64: 1, 32, 1>}]} {
    %c0_i32 = arith.constant 0 : i32
    %0 = arith.cmpi eq, %arg1, %c0_i32 : i32
    %1 = arith.extui %0 : i1 to i32
    %c0_i32_0 = arith.constant 0 : i32
    %2 = arith.cmpi ne, %1, %c0_i32_0 : i32
    scf.if %2 {
      %cst_14 = arith.constant 0.000000e+00 : f32
      %18 = vector.broadcast %cst_14 : f32 to vector<32x1xf32>
      %c0_15 = arith.constant 0 : index
      %c0_16 = arith.constant 0 : index
      %19 = vector.load %arg6[%c0_15, %c0_16] : memref<32x1xf32, #tpu.memory_space<vmem>>, vector<32x1xf32>
      tpu.vector_store %arg6[%c0_15, %c0_16], %18 {strides = array<i32>} : memref<32x1xf32, #tpu.memory_space<vmem>>, vector<32x1xf32>,
      %cst_17 = arith.constant 0xFF800000 : f32
      %20 = vector.broadcast %cst_17 : f32 to vector<32x1xf32>
      %c0_18 = arith.constant 0 : index
      %c0_19 = arith.constant 0 : index
      %21 = vector.load %arg7[%c0_18, %c0_19] : memref<32x1xf32, #tpu.memory_space<vmem>>, vector<32x1xf32>
      tpu.vector_store %arg7[%c0_18, %c0_19], %20 {strides = array<i32>} : memref<32x1xf32, #tpu.memory_space<vmem>>, vector<32x1xf32>,
    } else {
    }
    %c0 = arith.constant 0 : index
    %c0_1 = arith.constant 0 : index
    %c0_2 = arith.constant 0 : index
    %3 = vector.load %arg2[%c0, %c0_1, %c0_2] : memref<1x32x256xf32, #tpu.memory_space<vmem>>, vector<1x32x256xf32>
    %4 = vector.shape_cast %3 : vector<1x32x256xf32> to vector<32x256xf32>
    %c0_3 = arith.constant 0 : index
    %c0_4 = arith.constant 0 : index
    %5 = vector.load %arg6[%c0_3, %c0_4] : memref<32x1xf32, #tpu.memory_space<vmem>>, vector<32x1xf32>
    %cst = arith.constant dense<0.000000e+00> : vector<32xf32>
    %6 = vector.multi_reduction <add>, %4, %cst [1] : vector<32x256xf32> to vector<32xf32>
    %7 = vector.shape_cast %6 : vector<32xf32> to vector<32x1xf32>
    %8 = arith.addf %5, %7 : vector<32x1xf32>
    %c0_5 = arith.constant 0 : index
    %c0_6 = arith.constant 0 : index
    %9 = vector.load %arg6[%c0_5, %c0_6] : memref<32x1xf32, #tpu.memory_space<vmem>>, vector<32x1xf32>
    tpu.vector_store %arg6[%c0_5, %c0_6], %8 {strides = array<i32>} : memref<32x1xf32, #tpu.memory_space<vmem>>, vector<32x1xf32>,
    %c0_7 = arith.constant 0 : index
    %c0_8 = arith.constant 0 : index
    %10 = vector.load %arg7[%c0_7, %c0_8] : memref<32x1xf32, #tpu.memory_space<vmem>>, vector<32x1xf32>
    %cst_9 = arith.constant dense<0xFF800000> : vector<32xf32>
    %11 = vector.multi_reduction <maximumf>, %4, %cst_9 [1] : vector<32x256xf32> to vector<32xf32>
    %12 = vector.shape_cast %11 : vector<32xf32> to vector<32x1xf32>
    %13 = arith.maximumf %10, %12 : vector<32x1xf32>
    %c0_10 = arith.constant 0 : index
    %c0_11 = arith.constant 0 : index
    %14 = vector.load %arg7[%c0_10, %c0_11] : memref<32x1xf32, #tpu.memory_space<vmem>>, vector<32x1xf32>
    tpu.vector_store %arg7[%c0_10, %c0_11], %13 {strides = array<i32>} : memref<32x1xf32, #tpu.memory_space<vmem>>, vector<32x1xf32>,
    %c0_i32_12 = arith.constant 0 : i32
    %15 = arith.cmpi eq, %arg1, %c0_i32_12 : i32
    %16 = arith.extui %15 : i1 to i32
    %c0_i32_13 = arith.constant 0 : i32
    %17 = arith.cmpi ne, %16, %c0_i32_13 : i32
    scf.if %17 {
      %c0_14 = arith.constant 0 : index
      %c0_15 = arith.constant 0 : index
      %18 = vector.load %arg6[%c0_14, %c0_15] : memref<32x1xf32, #tpu.memory_space<vmem>>, vector<32x1xf32>
      %cst_16 = arith.constant 3.906250e-03 : f32
      %19 = vector.broadcast %cst_16 : f32 to vector<32x1xf32>
      %20 = arith.mulf %18, %19 : vector<32x1xf32>
      %c0_17 = arith.constant 0 : index
      %c0_18 = arith.constant 0 : index
      %21 = vector.load %arg7[%c0_17, %c0_18] : memref<32x1xf32, #tpu.memory_space<vmem>>, vector<32x1xf32>
      %c0_19 = arith.constant 0 : index
      %c0_20 = arith.constant 0 : index
      %22 = vector.load %arg3[%c0_19, %c0_20] : memref<2x32xf32, #tpu.memory_space<vmem>>, vector<2x32xf32>
      %cst_21 = arith.constant dense<0.000000e+00> : vector<2x1xf32>
      %23 = tpu.matmul %22, %20, %cst_21 {dimension_numbers = #tpu.dot_dimension_numbers<[1], [0], [0], [1], [0, 0, 1, 1], [], []>} : vector<2x32xf32>, vector<32x1xf32>, vector<2x1xf32> -> vector<2x1xf32>
      %cst_22 = arith.constant 0.000000e+00 : f32
      %24 = vector.broadcast %cst_22 : f32 to vector<2x1xf32>
      %25 = arith.maximumf %23, %24 : vector<2x1xf32>
      %cst_23 = arith.constant dense<0.000000e+00> : vector<2x1xf32>
      %26 = tpu.matmul %22, %21, %cst_23 {dimension_numbers = #tpu.dot_dimension_numbers<[1], [0], [0], [1], [0, 0, 1, 1], [], []>} : vector<2x32xf32>, vector<32x1xf32>, vector<2x1xf32> -> vector<2x1xf32>
      %cst_24 = arith.constant 0.000000e+00 : f32
      %27 = vector.broadcast %cst_24 : f32 to vector<2x1xf32>
      %28 = arith.maximumf %26, %27 : vector<2x1xf32>
      %29 = arith.addf %25, %28 : vector<2x1xf32>
      %c0_25 = arith.constant 0 : index
      %c0_26 = arith.constant 0 : index
      %30 = vector.load %arg4[%c0_25, %c0_26] : memref<32x2xf32, #tpu.memory_space<vmem>>, vector<32x2xf32>
      %cst_27 = arith.constant dense<0.000000e+00> : vector<32x1xf32>
      %31 = tpu.matmul %30, %29, %cst_27 {dimension_numbers = #tpu.dot_dimension_numbers<[1], [0], [0], [1], [0, 0, 1, 1], [], []>} : vector<32x2xf32>, vector<2x1xf32>, vector<32x1xf32> -> vector<32x1xf32>
      %32 = arith.negf %31 : vector<32x1xf32>
      %33 = math.exp %32 : vector<32x1xf32>
      %cst_28 = arith.constant 1.000000e+00 : f32
      %34 = vector.broadcast %cst_28 : f32 to vector<32x1xf32>
      %35 = arith.addf %34, %33 : vector<32x1xf32>
      %36 = arith.divf %34, %35 : vector<32x1xf32>
      %c0_29 = arith.constant 0 : index
      %c0_30 = arith.constant 0 : index
      %c0_31 = arith.constant 0 : index
      %37 = vector.load %arg5[%c0_29, %c0_30, %c0_31] : memref<1x32x1xf32, #tpu.memory_space<vmem>>, vector<1x32x1xf32>
      %38 = vector.shape_cast %37 : vector<1x32x1xf32> to vector<32x1xf32>
      %39 = vector.shape_cast %36 : vector<32x1xf32> to vector<1x32x1xf32>
      tpu.vector_store %arg5[%c0_29, %c0_30, %c0_31], %39 {strides = array<i32>} : memref<1x32x1xf32, #tpu.memory_space<vmem>>, vector<1x32x1xf32>,
    } else {
    }
    return
  }
  func.func @transform_0(%arg0: i32, %arg1: i32) -> (i32, i32, i32) {
    %c0_i32 = arith.constant 0 : i32
    %c0_i32_0 = arith.constant 0 : i32
    return %arg0, %c0_i32, %arg1 : i32, i32, i32
  }
  func.func @transform_1(%arg0: i32, %arg1: i32) -> (i32, i32) {
    %c0_i32 = arith.constant 0 : i32
    %c0_i32_0 = arith.constant 0 : i32
    %c0_i32_1 = arith.constant 0 : i32
    return %c0_i32, %c0_i32_0 : i32, i32
  }
  func.func @transform_2(%arg0: i32, %arg1: i32) -> (i32, i32) {
    %c0_i32 = arith.constant 0 : i32
    %c0_i32_0 = arith.constant 0 : i32
    %c0_i32_1 = arith.constant 0 : i32
    return %c0_i32, %c0_i32_0 : i32, i32
  }
  func.func @transform_3(%arg0: i32, %arg1: i32) -> (i32, i32, i32) {
    %c0_i32 = arith.constant 0 : i32
    %c0_i32_0 = arith.constant 0 : i32
    %c0_i32_1 = arith.constant 0 : i32
    return %arg0, %c0_i32, %c0_i32_0 : i32, i32, i32
  }
}

</mosaic_0001>

<bundles_post_ra>
// kernel: tpu_custom_call.1
= control target key start
LH: loop header
LB: loop body
LE: loop exit
PB: predicated region body
PF: predicated region fallthrough
CT: control target
= control target key end

     0   :  { %8 = vsyncpa [#allocation5], 0  ;;  %s1087_s0 = inlined_call_operand.hbm [shape: f32[2,32,256], index: 0, kind: input, shape index: {}]   ;;  %s1088_s1 = inlined_call_operand.vmem [shape: f32[2,32], index: 1, kind: input, shape index: {}]   ;;  %s1089_s2 = inlined_call_operand.vmem [shape: f32[32,2], index: 2, kind: input, shape index: {}]   ;;  %s1090_s3 = inlined_call_operand.vmem [shape: f32[2,32,1], index: 3, kind: output, shape index: {}]  }
   0x1   :  { %10 = vsyncpa [#allocation5 + $0x1], 0  ;;  %s924_s12 = smov 0   ;;  %s926_s13 = smov 0  }
   0x2   :  { %s928_s14 = smov 0   ;;  %s930_s15 = smov 0  }
   0x3   :  { %s932_s16 = smov 0   ;;  %s934_s17 = smov 0  }
   0x4 LB: > { %s653_s18 = sadd.s32 4294967295, %s895_s17   ;;  %s28_s19 = sadd.s32 1, %s891_s16  ;;  %s895_s17 = sphi %s934_s17, %s16_s17   ;;  %s891_s16 = sphi %s932_s16, %s1098_s16   ;;  %s887_s15 = sphi %s930_s15, %s1097_s15   ;;  %s883_s14 = sphi %s928_s14, %s1096_s14   ;;  %s879_s13 = sphi %s926_s13, %s1095_s13   ;;  %s875_s12 = sphi %s924_s12, %s1094_s12  }
   0x5   : > { %p30_p0 = scmp.ge.s32.totalorder %s28_s19, 2  ;;  %s37_s20 = sadd.s32 1, %s883_s14 }
   0x6   : > { %p44_p1 = scmp.ne.s32.totalorder %s883_s14, %s879_s13  ;;  %p45_p2 = scmp.eq.s32.totalorder %s895_s17, 0 }
   0x7   : > { %s1100_s19 = smov (%p30_p0, %s28_s19), 0  ;;  %p50_p4 = scmp.ne.s32.totalorder %s879_s13, %s875_s12 }
   0x8   : > { %p960_p3 = por %p45_p2, %p44_p1  ;;  %s32_s22 = ssub.s32 %s891_s16, %s1100_s19 }
   0x9   : > { %p51_p5 = scmp.eq.s32.totalorder %s653_s18, 0  ;;  %p35_p6 = scmp.eq.s32.totalorder %s32_s22, 0 }
   0xa   : > { %p744_p8 = scmp.lt.s32.totalorder %s895_s17, 2  ;;  %s148_s25 = sand.u32 1, %s883_s14  }
   0xb   : > { %p967_p7 = por %p51_p5, %p50_p4  ;;  %s677_s26 = sshll.u32 %s891_s16, 10 }
   0xc   : > { %s973_s24 = scalar_select %p35_p6, %s883_s14, %s37_s20  }
   0xd   : > { %s657_s27 = sshll.u32 %s148_s25, 6  ;;  %s980_s30 = scalar_lea.hbm %s1087_s0, %s677_s26 }
   0xe   : > { %s152_s4 = scalar_lea.vmem [#allocation4], %s657_s27  ;;  %p984_p9 = pnand %p744_p8, %p960_p3 }
   0xf   : > { %s161_s5 = sshll.u32 %s152_s4, 4  ;;  %s990_s7 = scalar_lea.sflag [#allocation5], %s148_s25  ;;  %s988_s5 = int_to_ptr.vmem [resolvable:$true] %s161_s5 }
  0x10   : > { %s815_s8 = scalar_lea.hbm %s980_s30, 1024  ;;  %p817_p11 = pneg %p984_p9 }
  0x11   : > { %p816_p10 = scmp.ne.s32.totalorder %s980_s30, %s815_s8  ;;  %s820_s11 = scalar_lea.hbm %s1087_s0, 2048 }
  0x12   : > { %p821_p0 = scmp.lt.u32.totalorder %s980_s30, %s1087_s0  ;;  %p822_p1 = scmp.lt.u32.totalorder %s820_s11, %s815_s8 }
  0x13   : > { %p818_p12 = pnand %p817_p11, %p816_p10  ;;  %p824_p3 = scmp.lt.u32.totalorder %s815_s8, %s980_s30 }
  0x14   : > { %p823_p2 = por %p822_p1, %p821_p0 }
  0x15   : > { %p819_p13 = pneg %p818_p12 }
  0x16   : > { %p825_p4 = por %p824_p3, %p823_p2 }
  0x18   : > { %p826_p5 = pnand %p825_p4, %p819_p13 }
  0x1a   : > { %829 = shalt.err (!%p826_p5)
}
  0x1b   : > { %s830_s20 = scalar_lea.vmem %s988_s5, 1024  ;;  %s897_s21 = smov [#allocation4]  }
  0x1c   : > { %p831_p6 = scmp.ne.s32.totalorder %s988_s5, %s830_s20  ;;  %s835_s22 = sshll.u32 %s897_s21, 4  ;;  %s836_s22 = int_to_ptr.vmem [resolvable:$false] %s835_s22 }
  0x1d   : > { %s837_s25 = scalar_lea.vmem %s836_s22, 2048  ;;  %p838_p12 = scmp.lt.s32.totalorder %s988_s5, %s836_s22 }
  0x1e   : > { %p833_p8 = pnand %p831_p6, %p817_p11  ;;  %p839_p0 = scmp.lt.s32.totalorder %s837_s25, %s830_s20 }
  0x20   : > { %p834_p10 = pneg %p833_p8  ;;  %p840_p1 = por %p839_p0, %p838_p12 }
  0x22   : > { %p841_p2 = pnand %p840_p1, %p834_p10 }
  0x24   : > { %844 = shalt.err (!%p841_p2)
}
  0x25   : > { %s898_s26 = smov 256   ;;  %s899_s27 = smov 16  }
  0x26   : > { %743 = dma.hbm_to_vmem [thread:$0]  (!%p984_p9), %s980_s30, 1024, %s988_s5, %s990_s7, %s898_s26, %s898_s26, %s899_s27  }
  0x27   : > { %p660_p11 = scmp.ge.s32.totalorder %s895_s17, 1  ;;  %p169_p13 = scmp.lt.s32.totalorder %s895_s17, 3 }
  0x29   : > { %p170_p3 = pnand %p660_p11, %p169_p13 }
  0x2a   : > { %s175_s28 = sand.u32 (!%p170_p3), 1, %s879_s13  }
  0x2b   : > { %173 = sbr.rel (%p170_p3) target bundleno = 683 (0x2ab), region = 32  ;;  %s661_s29 = sshll.u32 (!%p170_p3), %s175_s28, 6 }
  0x2c   : > { %s176_s4 = scalar_lea.sflag (!%p170_p3), [#allocation5], %s175_s28  ;;  %s179_s8 = scalar_lea.vmem (!%p170_p3), [#allocation4], %s661_s29 }
  0x32   : > { %870 = dma.done.wait (%p967_p7), %s176_s4, 1024  }
  0x33   : > { %872 = vsyncadd (%p967_p7), %s176_s4, 4294966272  ;;  %vm212_vm0 = vcmask 7168   ;;  %v900_v0 = vmov -inf   ;;  %v221_v1 = vld [vmem:[%s179_s8] sm:$0xff]  ;;  %v222_v2 = vld [vmem:[%s179_s8 + $0x8] sm:$0xff]  ;;  %v901_v15 = vmov 0.0  }
  0x34   : > { %217 = vst.msk [vmem:[#allocation3] sm:$0xff] %vm212_vm0, %v900_v0  ;;  %218 = vst.msk [vmem:[#allocation3 + $0x8] sm:$0xff] %vm212_vm0, %v900_v0  ;;  %v223_v3 = vld [vmem:[%s179_s8 + $0x10] sm:$0xff]  ;;  %v258_v4 = vmax.f32 %v221_v1, %v222_v2  ;;  %v233_v5 = vadd.f32 %v222_v2, %v221_v1  ;;  %v224_v6 = vld [vmem:[%s179_s8 + $0x18] sm:$0xff]  ;;  %v902_v18 = vmov 0.0|0.0   ;;  %vm903_vm1 = vmmov 0  }
  0x35   : > { %219 = vst.msk [vmem:[#allocation3 + $0x10] sm:$0xff] %vm212_vm0, %v900_v0  ;;  %220 = vst.msk [vmem:[#allocation3 + $0x18] sm:$0xff] %vm212_vm0, %v900_v0  ;;  %v261_v7 = vmax.f32 %v223_v3, %v224_v6  ;;  %v236_v8 = vadd.f32 %v224_v6, %v223_v3  ;;  %v227_v9 = vld [vmem:[%s179_s8 + $0x30] sm:$0xff]  ;;  %v228_v10 = vld [vmem:[%s179_s8 + $0x38] sm:$0xff]  ;;  %730 = vmatprep.subr.bf16.mxu1 %v902_v18  ;;  %724 = vmatprep.subr.bf16.mxu0 %v902_v18  ;;  %vm294_vm2 = vcmask 261120   ;;  %vm445_vm3 = vcmask 15360  }
  0x36   : > { %259 = vmax.xlane.f32.xlu1 %v258_v4  ;;  %234 = vadd.xlane.f32.xlu0 %v233_v5  ;;  %v225_v11 = vld [vmem:[%s179_s8 + $0x20] sm:$0xff]  ;;  %v226_v12 = vld [vmem:[%s179_s8 + $0x28] sm:$0xff]  ;;  %v242_v13 = vadd.f32 %v228_v10, %v227_v9  ;;  %213 = vst.msk [vmem:[#allocation2] sm:$0xff] %vm212_vm0, %v901_v15  ;;  %214 = vst.msk [vmem:[#allocation2 + $0x8] sm:$0xff] %vm212_vm0, %v901_v15  ;;  %v267_v16 = vmax.f32 %v227_v9, %v228_v10  ;;  %vm458_vm4 = vcmask 1041408   ;;  %p203_p7 = scmp.lt.s32.totalorder %s887_s15, 1 }
  0x37   : > { %v239_v14 = vadd.f32 %v226_v12, %v225_v11  ;;  %215 = vst.msk [vmem:[#allocation2 + $0x10] sm:$0xff] %vm212_vm0, %v901_v15  ;;  %216 = vst.msk [vmem:[#allocation2 + $0x18] sm:$0xff] %vm212_vm0, %v901_v15  ;;  %v264_v17 = vmax.f32 %v225_v11, %v226_v12  ;;  %702 = vmatprep.mubr.msk.f32.mxu0 %vm903_vm1, %v901_v15  ;;  %713 = vmatprep.mubr.msk.f32.mxu1 %vm903_vm1, %v901_v15  ;;  %v293_v59 = vld [vmem:[%s1088_s1] sm:$0x3]  ;;  %v443_v61 = vld [vmem:[%s1089_s2 + $0x10] sm:$0xff] }
  0x38   : > { %v441_v60 = vld [vmem:[%s1089_s2] sm:$0xff]  ;;  %v442_v5 = vld [vmem:[%s1089_s2 + $0x8] sm:$0xff]  ;;  %v444_v6 = vld [vmem:[%s1089_s2 + $0x18] sm:$0xff]  ;;  %s1102_s15 = smov (!%p203_p7, %s887_s15), 1 }
  0x39   : > { %s678_s20 = sshll.u32 %s1102_s15, 5 }
  0x3a   : > { %262 = vmax.xlane.f32.xlu1 %v261_v7  ;;  %237 = vadd.xlane.f32.xlu0 %v236_v8  ;;  %s207_s25 = scalar_lea.vmem %s1090_s3, %s678_s20 }
  0x3b   : > { %v254_v19 = vld [vmem:[#allocation3] sm:$0xff]  ;;  %v255_v25 = vld [vmem:[#allocation3 + $0x8] sm:$0xff] }
  0x3c   : > { %v257_v37 = vld [vmem:[#allocation3 + $0x18] sm:$0xff]  ;;  %v256_v38 = vld [vmem:[#allocation3 + $0x10] sm:$0xff] }
  0x3d   : > { %v229_v20 = vld [vmem:[#allocation2] sm:$0xff]  ;;  %v230_v26 = vld [vmem:[#allocation2 + $0x8] sm:$0xff] }
  0x3e   : > { %243 = vadd.xlane.f32.xlu1 %v242_v13  ;;  %240 = vadd.xlane.f32.xlu0 %v239_v14  ;;  %v232_v31 = vld [vmem:[#allocation2 + $0x18] sm:$0xff]  ;;  %v231_v32 = vld [vmem:[#allocation2 + $0x10] sm:$0xff] }
  0x42   : > { %268 = vmax.xlane.f32.xlu1 %v267_v16  ;;  %265 = vmax.xlane.f32.xlu0 %v264_v17 }
  0xc3   : > { %v260_v21 = vpop.xlane.xlu1 %259  ;;  %v235_v22 = vpop.xlane.xlu0 %234 }
  0xc4   : > { %v270_v23 = vmax.f32 %v254_v19, %v260_v21  ;;  %v245_v24 = vadd.f32 %v235_v22, %v229_v20 }
  0xc6   : > { %274 = vst.msk [vmem:[#allocation3] sm:$0xff] %vm212_vm0, %v270_v23  ;;  %250 = vst.msk [vmem:[#allocation2] sm:$0xff] %vm212_vm0, %v245_v24 }
  0xc7   : > { %v263_v27 = vpop.xlane.xlu1 %262  ;;  %v238_v28 = vpop.xlane.xlu0 %237 }
  0xc8   : > { %v271_v29 = vmax.f32 %v255_v25, %v263_v27  ;;  %v246_v30 = vadd.f32 %v238_v28, %v230_v26 }
  0xca   : > { %275 = vst.msk [vmem:[#allocation3 + $0x8] sm:$0xff] %vm212_vm0, %v271_v29  ;;  %251 = vst.msk [vmem:[#allocation2 + $0x8] sm:$0xff] %vm212_vm0, %v246_v30 }
  0xcb   : > { %v244_v33 = vpop.xlane.xlu1 %243  ;;  %v241_v34 = vpop.xlane.xlu0 %240 }
  0xcc   : > { %v248_v35 = vadd.f32 %v244_v33, %v232_v31  ;;  %v247_v36 = vadd.f32 %v241_v34, %v231_v32 }
  0xcd   : > { %v281_v41 = vld [vmem:[#allocation2] sm:$0xff] }
  0xce   : > { %253 = vst.msk [vmem:[#allocation2 + $0x18] sm:$0xff] %vm212_vm0, %v248_v35  ;;  %252 = vst.msk [vmem:[#allocation2 + $0x10] sm:$0xff] %vm212_vm0, %v247_v36  ;;  %v289_v44 = vld [vmem:[#allocation3] sm:$0xff]  ;;  %v285_v48 = vmul.f32 0.00390625, %v281_v41 }
  0xcf   : > { %v269_v39 = vpop.xlane.xlu1 %268  ;;  %v266_v40 = vpop.xlane.xlu0 %265 }
  0xd0   : > { %v273_v42 = vmax.f32 %v257_v37, %v269_v39  ;;  %v272_v43 = vmax.f32 %v256_v38, %v266_v40 }
  0xd1   : > { %v290_v45 = vld [vmem:[#allocation3 + $0x8] sm:$0xff] }
  0xd2   : > { %v282_v46 = vld [vmem:[#allocation2 + $0x8] sm:$0xff]  ;;  %277 = vst.msk [vmem:[#allocation3 + $0x18] sm:$0xff] %vm212_vm0, %v273_v42  ;;  %276 = vst.msk [vmem:[#allocation3 + $0x10] sm:$0xff] %vm212_vm0, %v272_v43  ;;  %v731_v47 = vpack.c.bf16 %v290_v45, %v289_v44 }
  0xd3   : > { %v286_v49 = vmul.f32 0.00390625, %v282_v46 }
  0xd4   : > { %732 = vmatpush3.bf16.msra.mxu1 %v731_v47 }
  0xd5   : > { %v725_v50 = vpack.c.bf16 %v286_v49, %v285_v48  ;;  %v283_v51 = vld [vmem:[#allocation2 + $0x10] sm:$0xff]  ;;  %v284_v52 = vld [vmem:[#allocation2 + $0x18] sm:$0xff]  ;;  %733 = vmatprep.subr.bf16.mxu1 %v902_v18 }
  0xd6   : > { %v287_v53 = vmul.f32 0.00390625, %v283_v51  ;;  %v288_v54 = vmul.f32 0.00390625, %v284_v52 }
  0xd7   : > { %726 = vmatpush3.bf16.msra.mxu0 %v725_v50 }
  0xd8   : > { %727 = vmatprep.subr.bf16.mxu0 %v902_v18  ;;  %v728_v55 = vpack.c.bf16 %v288_v54, %v287_v53 }
  0xd9   : > { %v291_v56 = vld [vmem:[#allocation3 + $0x10] sm:$0xff]  ;;  %v292_v57 = vld [vmem:[#allocation3 + $0x18] sm:$0xff] }
  0xda   : > { %v734_v58 = vpack.c.bf16 %v292_v57, %v291_v56 }
  0xdb   : > { %729 = vmatpush3.bf16.msra.mxu0 %v728_v55 }
  0xdc   : > { %735 = vmatpush3.bf16.msra.mxu1 %v734_v58 }
  0xde   : > { %703 = vmatmul.mubr.msk.f32.vlgmr.msra.gmra.mrb[0].mxu0 %vm294_vm2, %v293_v59 }
  0xdf   : > { %714 = vmatmul.mubr.msk.f32.vlgmr.msra.gmra.mrb[0].mxu1 %vm294_vm2, %v293_v59  ;;  %718 = vmatprep.mubr.msk.f32.mxu0 %vm445_vm3, %v441_v60 }
  0xe0   : > { %721 = vmatprep.mubr.msk.f32.mxu1 %vm445_vm3, %v443_v61 }
 0x1b1   : > { %v364_v62 = vpop.f32.mrb[0].mxu0 }
 0x1b2   : > { %v368_v63 = vmax.f32 %v364_v62, 0.0  ;;  %v704_v0 = vpop.f32.mrb[1].mxu0  ;;  %v435_v1 = vpop.f32.mrb[0].mxu1 }
 0x1b3   : > { %v439_v2 = vmax.f32 %v435_v1, 0.0  ;;  %v715_v3 = vpop.f32.mrb[1].mxu1 }
 0x1b5   : > { %v440_v4 = vadd.f32 %v439_v2, %v368_v63 }
 0x1b7   : > { %716 = vmatprep.subr.msk.mxu0 %vm458_vm4, %v440_v4  ;;  %736 = vmatprep.subr.msk.mxu1 %vm458_vm4, %v440_v4 }
 0x1b8   : > { %717 = vmatpush3.msk.msra.mxu0 %vm458_vm4, %v440_v4  ;;  %737 = vmatpush3.msk.msra.mxu1 %vm458_vm4, %v440_v4 }
 0x1b9   : > { %719 = vmatmul.mubr.msk.f32.vlgmr.msra.gmra.mrb[2].mxu0 %vm445_vm3, %v442_v5  ;;  %722 = vmatmul.mubr.msk.f32.vlgmr.msra.gmra.mrb[2].mxu1 %vm445_vm3, %v444_v6 }
 0x28c   : > { %v720_v7 = vpop.f32.mrb[2].mxu0  ;;  %v723_v8 = vpop.f32.mrb[2].mxu1 }
 0x28d   : > { %v672_v9 = vmul.f32 -1.442695, %v720_v7  ;;  %v674_v10 = vmul.f32 -1.442695, %v723_v8  ;;  %v528_v11 = vpop.f32.mrb[3].mxu0  ;;  %v538_v12 = vpop.f32.mrb[3].mxu1 }
 0x28e   : > { %v671_v13 = vmul.f32 -1.442695, %v528_v11  ;;  %v673_v14 = vmul.f32 -1.442695, %v538_v12 }
 0x28f   : > { %799 = vpow2.f32 %v672_v9 }
 0x290   : > { %801 = vpow2.f32 %v674_v10 }
 0x291   : > { %803 = vpow2.f32 %v671_v13 }
 0x292   : > { %805 = vpow2.f32 %v673_v14 }
 0x299   : > { %v800_v15 = vpop.eup %799 }
 0x29a   : > { %v802_v16 = vpop.eup %801  ;;  %v560_v17 = vadd.f32 1.0, %v800_v15 }
 0x29b   : > { %v804_v18 = vpop.eup %803  ;;  %v562_v19 = vadd.f32 1.0, %v802_v16 }
 0x29c   : > { %v806_v20 = vpop.eup %805  ;;  %807 = vrcp.f32 %v560_v17  ;;  %v559_v21 = vadd.f32 1.0, %v804_v18 }
 0x29d   : > { %809 = vrcp.f32 %v562_v19  ;;  %v561_v22 = vadd.f32 1.0, %v806_v20 }
 0x29e   : > { %811 = vrcp.f32 %v559_v21 }
 0x29f   : > { %813 = vrcp.f32 %v561_v22 }
 0x2a6   : > { %v808_v23 = vpop.eup %807 }
 0x2a7   : > { %v810_v24 = vpop.eup %809  ;;  %572 = vst.msk [vmem:[%s207_s25 + $0x8] sm:$0xff] %vm212_vm0, %v808_v23 }
 0x2a8   : > { %v812_v25 = vpop.eup %811  ;;  %574 = vst.msk [vmem:[%s207_s25 + $0x18] sm:$0xff] %vm212_vm0, %v810_v24 }
 0x2a9   : > { %v814_v26 = vpop.eup %813  ;;  %571 = vst.msk [vmem:[%s207_s25] sm:$0xff] %vm212_vm0, %v812_v25 }
 0x2aa   : > { %573 = vst.msk [vmem:[%s207_s25 + $0x10] sm:$0xff] %vm212_vm0, %v814_v26 }
 0x2ab PF: > { %s16_s17 = sadd.s32 1, %s895_s17   ;;  %s1094_s12 = smov %s879_s13 }
 0x2ac   : > { %p13_p9 = scmp.ge.s32.totalorder %s16_s17, 4   ;;  %s1095_s13 = smov %s883_s14 }
 0x2ad   : > { %s1096_s14 = smov %s973_s24  ;;  %s1097_s15 = smov %s891_s16 }
 0x2ae   : > { %s1098_s16 = smov %s1100_s19  ;;  %15 = sbr.rel (!%p13_p9) target bundleno = 4 (0x4), region = 80 }
 0x2b5   :  { %596 = vsyncpa [#allocation5], 1 }
 0x2b6   :  { %598 = vsyncpa [#allocation5 + $0x1], 1 }

</bundles_post_ra>
